<compile_context>
chip_gen: v7x
topology: tpu7x:2x2x1
jax: 0.10.0
libtpu: 0.0.40
codegen_flags: <defaults>
</compile_context>

<pallas_src>
import jax
import jax.numpy as jnp
from jax.experimental import pallas as pl
from jax.experimental.pallas import tpu as pltpu

LANES = 128        # lane width of the partial-sum rows
SUM_ROWS = 8       # full-vreg sublane count (rows 0..3 used, 4..7 zero pad)
_F32_TEMP_BYTES = 6 * 4   # ~6 live f32 block temporaries (m, e, d, comp, ...)


def _vmem_budget_bytes():
    """Return (block budget, vmem_limit_bytes) sized per TPU generation."""
    cap = 128 * 1024 * 1024
    try:
        info = pltpu.get_tpu_info()
        cap = int(getattr(info, "vmem_capacity_bytes", cap) or cap)
    except Exception:        # CPU / interpret fallback: assume 128 MiB parts
        pass
    vmem_limit = (cap * 3) // 4              # ~96 MiB v5e/v6e, ~48 MiB v7x
    block_budget = (vmem_limit * 17) // 20   # headroom for internal scratch
    return block_budget, vmem_limit


def _pick_blocks(B, C, H, W, input_itemsize_sum, budget_bytes):
    """Choose (TB, TC): batch / channel elements per grid step.

    Per block element the VMEM cost is ~ 2 pipeline buffers x the summed
    input itemsizes plus the f32 temporaries materialized inside the kernel.
    """
    per_elem = 2 * input_itemsize_sum + _F32_TEMP_BYTES
    max_elems = max(1, budget_bytes // per_elem)
    plane = H * W

    # Largest divisor of C whose channel stack fits the budget.
    # TODO(synk): non-divisor TC (pl.cdiv + ragged last block under pl.when)
    # and H-tiling for very large planes are not implemented.
    tc = 1
    for d in range(1, C + 1):
        if C % d == 0 and d * plane <= max_elems:
            tc = d

    tb = 1
    if tc == C:                      # whole channel stack fits: fold batches
        for d in range(1, B + 1):
            if B % d == 0 and d * C * plane <= max_elems:
                tb = d

    # Keep >= 2 grid steps when possible so both v7x TensorCores stay busy.
    if (B // tb) * (C // tc) < 2:
        if tb > 1:
            tb = max(d for d in range(1, B) if B % d == 0)
        elif tc > 1:
            tc = max(d for d in range(1, C) if C % d == 0)
        # TODO(synk): B == C == 1 single-step grids could be split along H.
    return tb, tc


def _tv_partial_sums(comp):
    """TV numerators along W (lanes) and H (sublanes) of one block."""
    H, W = comp.shape[-2], comp.shape[-1]

    if W > 1 and W % LANES == 0:
        # Lane-dense block: pltpu.roll runs in the otherwise-idle XLU slot
        # and avoids the relayout copy an off-by-one slice forces.  The
        # wrap-around term |comp[...,0] - comp[...,W-1]| is subtracted
        # explicitly, which makes the result independent of the roll
        # direction convention.
        rolled = pltpu.roll(comp, shift=-1, axis=-1)
        tvw = (jnp.sum(jnp.abs(rolled - comp))
               - jnp.sum(jnp.abs(comp[..., 0] - comp[..., W - 1])))
    else:
        # TODO(synk): non-lane-dense W keeps the shifted-slice fallback
        # (Mosaic materializes one relaid-out copy of `comp`).
        tvw = jnp.sum(jnp.abs(comp[..., :-1] - comp[..., 1:]))

    if H > 1 and H % 8 == 0 and W % LANES == 0:
        rolled = pltpu.roll(comp, shift=-1, axis=-2)
        tvh = (jnp.sum(jnp.abs(rolled - comp))
               - jnp.sum(jnp.abs(comp[..., 0, :] - comp[..., H - 1, :])))
    else:
        tvh = jnp.sum(jnp.abs(comp[..., :-1, :] - comp[..., 1:, :]))
    return tvw, tvh


def _loss_kernel(mask_ref, pred_ref, gt_ref, sums_ref):
    """One (TB, TC, H, W) block -> one (8, 128) block of partial sums.

    Rows: 0 = sum m*|pred-gt|                    (valid numerator)
          1 = sum (1-m)*|pred-gt|                (hole numerator)
          2 = sum |comp[..,w] - comp[..,w+1]|    (TV along W)
          3 = sum |comp[..,h,:]-comp[..,h+1,:]|  (TV along H)
          4..7 = 0 (padding so the store is one unmasked (8,128) vreg)
    """
    # prepare_data_dict semantics: loss_mask is overwritten with img_mask,
    # so mask = clamp(img_mask + img_mask, 0, 1).
    m = jnp.clip(mask_ref[...].astype(jnp.float32) * 2.0, 0.0, 1.0)
    pred = pred_ref[...].astype(jnp.float32)
    gt = gt_ref[...].astype(jnp.float32)

    e = gt - pred                      # shared by valid / hole / comp
    d = jnp.abs(e)                     # |m*(pred-gt)| == m*|pred-gt| (0<=m<=1)
    valid_sum = jnp.sum(m * d)
    hole_sum = jnp.sum((1.0 - m) * d)  # direct sum: no large-sum cancellation

    comp = pred + m * e                # == m*gt + (1-m)*pred
    tvw_sum, tvh_sum = _tv_partial_sums(comp)

    row = jax.lax.broadcasted_iota(jnp.int32, (SUM_ROWS, LANES), 0)
    sums_ref[...] = jnp.where(
        row == 0, valid_sum,
        jnp.where(row == 1, hole_sum,
                  jnp.where(row == 2, tvw_sum,
                            jnp.where(row == 3, tvh_sum, 0.0))))


def _loss_partial_sums(img_mask, output, gt, rs):
    """5-D inputs (B, T, C, H, W) -> (NB, NC, 8, 128) f32 partial sums."""
    B, _, C, H, W = output.shape
    budget, vmem_limit = _vmem_budget_bytes()
    itemsize_sum = sum(int(x.dtype.itemsize) for x in (img_mask, output, gt))
    TB, TC = _pick_blocks(B, C, H, W, itemsize_sum, budget)
    NB, NC = B // TB, C // TC

    # Recurrent-step + batch/channel block selection is fused into the
    # index_map, so the kernel reads the 5-D tensors straight from HBM
    # (no wrapper-side slice / reshape / astype pass).
    in_spec = pl.BlockSpec((TB, None, TC, H, W),
                           lambda b, c: (b, rs, c, 0, 0))

    return pl.pallas_call(
        _loss_kernel,
        out_shape=jax.ShapeDtypeStruct((NB, NC, SUM_ROWS, LANES), jnp.float32),
        grid=(NB, NC),
        in_specs=[in_spec, in_spec, in_spec],
        out_specs=pl.BlockSpec((None, None, SUM_ROWS, LANES),
                               lambda b, c: (b, c, 0, 0)),
        compiler_params=pltpu.CompilerParams(
            dimension_semantics=("parallel", "parallel"),
            vmem_limit_bytes=vmem_limit),
    )(img_mask, output, gt)


class LossComputation:
    """JAX/Pallas port of climatereconstructionai LossComputation forward."""

    def __init__(self, lambda_dict, recurrent_steps=1, gt_channels=None):
        self.lambda_dict = dict(lambda_dict)
        self.recurrent_steps = recurrent_steps
        self.gt_channels = gt_channels

    def __call__(self, img_mask, loss_mask, output, gt):
        # loss_mask is ignored: prepare_data_dict overwrites it with img_mask.
        del loss_mask
        B, T, C, H, W = output.shape
        del T

        gtc = self.gt_channels
        if gtc is None or (len(gtc) == C and list(gtc) == list(range(C))):
            gt_eff = gt          # identity channel selection: zero-copy path
        else:
            # TODO(synk): non-identity gt_channels falls back to a wrapper
            # gather (could be fused via a scalar-prefetch index_map).
            gt_eff = jnp.take(gt, jnp.asarray(gtc), axis=2)

        # NOTE: mirrors the source exactly: output[:, cfg.recurrent_steps]
        # uses recurrent_steps as a direct time index.
        sums = _loss_partial_sums(img_mask, output, gt_eff,
                                  self.recurrent_steps)
        totals = jnp.sum(sums[:, :, :, 0], axis=(0, 1))   # (8,) partial sums

        n_all = float(B * C * H * W)
        valid = totals[0] / n_all                        # L1(m*out, m*gt)
        hole = totals[1] / n_all                         # L1((1-m)*out, (1-m)*gt)
        tv = (totals[2] / float(B * C * H * (W - 1))
              + totals[3] / float(B * C * (H - 1) * W))  # TV(comp)

        loss_dict = {'valid': valid, 'hole': hole, 'tv': tv}

        out_dict = {}
        total = jnp.float32(0.0)
        for name, lam in self.lambda_dict.items():
            if lam > 0 and name in loss_dict:
                w = loss_dict[name] * lam
                total = total + w
                out_dict[name] = w
        out_dict['total'] = total
        return out_dict


def _reference_total(img_mask, output, gt, rs, gt_channels, lambda_dict):
    """Pure-JAX reference mirroring the PyTorch semantics."""
    m = jnp.clip(img_mask[:, rs] + img_mask[:, rs], 0.0, 1.0)
    out = output[:, rs]
    g = gt[:, rs][:, jnp.asarray(gt_channels)]
    valid = jnp.mean(jnp.abs(m * out - m * g))
    hole = jnp.mean(jnp.abs((1.0 - m) * out - (1.0 - m) * g))
    comp = m * g + (1.0 - m) * out
    tv = (jnp.mean(jnp.abs(comp[..., :-1] - comp[..., 1:]))
          + jnp.mean(jnp.abs(comp[..., :-1, :] - comp[..., 1:, :])))
    return (lambda_dict['valid'] * valid
            + lambda_dict['hole'] * hole
            + lambda_dict['tv'] * tv)


if __name__ == "__main__":
    key = jax.random.PRNGKey(0)
    B, T, C, H, W = 2, 2, 4, 16, 16
    k1, k2, k3 = jax.random.split(key, 3)

    output = jax.random.normal(k1, (B, T, C, H, W), jnp.float32)
    gt = jax.random.normal(k2, (B, T, C, H, W), jnp.float32)
    # Mask may also be stored narrow (bf16/int8) upstream; the kernel upcasts.
    img_mask = (jax.random.uniform(k3, (B, T, C, H, W)) > 0.5).astype(jnp.float32)
    loss_mask = img_mask  # overwritten inside prepare_data_dict anyway

    lambda_dict = {'valid': 1.0, 'hole': 6.0, 'tv': 0.1, 'style': 0.0, 'prc': 0.0}
    gt_channels = list(range(C))
    recurrent_steps = 1

    loss_comp = LossComputation(lambda_dict, recurrent_steps=recurrent_steps,
                                gt_channels=gt_channels)
    loss_dict = loss_comp(img_mask, loss_mask, output, gt)
    total = jax.block_until_ready(loss_dict['total'])

    ref_total = jax.block_until_ready(
        _reference_total(img_mask, output, gt, recurrent_steps,
                         gt_channels, lambda_dict))

    assert jnp.allclose(total, ref_total, rtol=1e-5, atol=1e-6), (total, ref_total)
    print("KERNEL_OK")
</pallas_src>

<mosaic_0001>
module attributes {stable_mosaic.version = 11 : i64} {
  func.func @_loss_kernel(%arg0: i32, %arg1: i32, %arg2: memref<1x1x4x16x16xf32, #tpu.memory_space<vmem>>, %arg3: memref<1x1x4x16x16xf32, #tpu.memory_space<vmem>>, %arg4: memref<1x1x4x16x16xf32, #tpu.memory_space<vmem>>, %arg5: memref<1x1x8x128xf32, #tpu.memory_space<vmem>>) attributes {dimension_semantics = [#tpu.dimension_semantics<parallel>, #tpu.dimension_semantics<parallel>], iteration_bounds = array<i64: 2, 1>, scalar_prefetch = 0 : i64, scratch_operands = 0 : i64, tpu.core_type = #tpu.core_type<tc>, window_params = [{transform_indices = @transform_0, window_bounds = array<i64: 1, 1, 4, 16, 16>}, {transform_indices = @transform_1, window_bounds = array<i64: 1, 1, 4, 16, 16>}, {transform_indices = @transform_2, window_bounds = array<i64: 1, 1, 4, 16, 16>}, {transform_indices = @transform_3, window_bounds = array<i64: 1, 1, 8, 128>}]} {
    %c0 = arith.constant 0 : index
    %c0_0 = arith.constant 0 : index
    %c0_1 = arith.constant 0 : index
    %c0_2 = arith.constant 0 : index
    %c0_3 = arith.constant 0 : index
    %0 = vector.load %arg2[%c0, %c0_0, %c0_1, %c0_2, %c0_3] : memref<1x1x4x16x16xf32, #tpu.memory_space<vmem>>, vector<1x1x4x16x16xf32>
    %1 = vector.shape_cast %0 : vector<1x1x4x16x16xf32> to vector<1x4x16x16xf32>
    %cst = arith.constant 2.000000e+00 : f32
    %2 = vector.broadcast %cst : f32 to vector<1x4x16x16xf32>
    %3 = arith.mulf %1, %2 : vector<1x4x16x16xf32>
    %cst_4 = arith.constant 0.000000e+00 : f32
    %cst_5 = arith.constant 1.000000e+00 : f32
    %4 = vector.broadcast %cst_4 : f32 to vector<1x4x16x16xf32>
    %5 = arith.maximumf %4, %3 : vector<1x4x16x16xf32>
    %6 = vector.broadcast %cst_5 : f32 to vector<1x4x16x16xf32>
    %7 = arith.minimumf %6, %5 : vector<1x4x16x16xf32>
    %c0_6 = arith.constant 0 : index
    %c0_7 = arith.constant 0 : index
    %c0_8 = arith.constant 0 : index
    %c0_9 = arith.constant 0 : index
    %c0_10 = arith.constant 0 : index
    %8 = vector.load %arg3[%c0_6, %c0_7, %c0_8, %c0_9, %c0_10] : memref<1x1x4x16x16xf32, #tpu.memory_space<vmem>>, vector<1x1x4x16x16xf32>
    %9 = vector.shape_cast %8 : vector<1x1x4x16x16xf32> to vector<1x4x16x16xf32>
    %c0_11 = arith.constant 0 : index
    %c0_12 = arith.constant 0 : index
    %c0_13 = arith.constant 0 : index
    %c0_14 = arith.constant 0 : index
    %c0_15 = arith.constant 0 : index
    %10 = vector.load %arg4[%c0_11, %c0_12, %c0_13, %c0_14, %c0_15] : memref<1x1x4x16x16xf32, #tpu.memory_space<vmem>>, vector<1x1x4x16x16xf32>
    %11 = vector.shape_cast %10 : vector<1x1x4x16x16xf32> to vector<1x4x16x16xf32>
    %12 = arith.subf %11, %9 : vector<1x4x16x16xf32>
    %13 = math.absf %12 : vector<1x4x16x16xf32>
    %14 = arith.mulf %7, %13 : vector<1x4x16x16xf32>
    %15 = vector.shape_cast %14 : vector<1x4x16x16xf32> to vector<1x1x4x16x16xf32>
    %cst_16 = arith.constant dense<0.000000e+00> : vector<1xf32>
    %16 = vector.multi_reduction <add>, %15, %cst_16 [1, 2, 3, 4] : vector<1x1x4x16x16xf32> to vector<1xf32>
    %17 = vector.shape_cast %16 : vector<1xf32> to vector<1x1x1x1x1xf32>
    %18 = vector.extract %17[0, 0, 0, 0, 0] : f32 from vector<1x1x1x1x1xf32>
    %cst_17 = arith.constant 1.000000e+00 : f32
    %19 = vector.broadcast %cst_17 : f32 to vector<1x4x16x16xf32>
    %20 = arith.subf %19, %7 : vector<1x4x16x16xf32>
    %21 = arith.mulf %20, %13 : vector<1x4x16x16xf32>
    %22 = vector.shape_cast %21 : vector<1x4x16x16xf32> to vector<1x1x4x16x16xf32>
    %cst_18 = arith.constant dense<0.000000e+00> : vector<1xf32>
    %23 = vector.multi_reduction <add>, %22, %cst_18 [1, 2, 3, 4] : vector<1x1x4x16x16xf32> to vector<1xf32>
    %24 = vector.shape_cast %23 : vector<1xf32> to vector<1x1x1x1x1xf32>
    %25 = vector.extract %24[0, 0, 0, 0, 0] : f32 from vector<1x1x1x1x1xf32>
    %26 = arith.mulf %7, %12 : vector<1x4x16x16xf32>
    %27 = arith.addf %9, %26 : vector<1x4x16x16xf32>
    %28 = vector.extract_strided_slice %27 {offsets = [0, 0, 0, 0], sizes = [1, 4, 16, 15], strides = [1, 1, 1, 1]} : vector<1x4x16x16xf32> to vector<1x4x16x15xf32>
    %29 = vector.extract_strided_slice %27 {offsets = [0, 0, 0, 1], sizes = [1, 4, 16, 15], strides = [1, 1, 1, 1]} : vector<1x4x16x16xf32> to vector<1x4x16x15xf32>
    %30 = arith.subf %28, %29 : vector<1x4x16x15xf32>
    %31 = math.absf %30 : vector<1x4x16x15xf32>
    %32 = vector.shape_cast %31 : vector<1x4x16x15xf32> to vector<1x1x4x16x15xf32>
    %cst_19 = arith.constant dense<0.000000e+00> : vector<1xf32>
    %33 = vector.multi_reduction <add>, %32, %cst_19 [1, 2, 3, 4] : vector<1x1x4x16x15xf32> to vector<1xf32>
    %34 = vector.shape_cast %33 : vector<1xf32> to vector<1x1x1x1x1xf32>
    %35 = vector.extract %34[0, 0, 0, 0, 0] : f32 from vector<1x1x1x1x1xf32>
    %36 = vector.extract_strided_slice %27 {offsets = [0, 0, 0, 0], sizes = [1, 4, 15, 16], strides = [1, 1, 1, 1]} : vector<1x4x16x16xf32> to vector<1x4x15x16xf32>
    %37 = vector.extract_strided_slice %27 {offsets = [0, 0, 1, 0], sizes = [1, 4, 15, 16], strides = [1, 1, 1, 1]} : vector<1x4x16x16xf32> to vector<1x4x15x16xf32>
    %38 = arith.subf %36, %37 : vector<1x4x15x16xf32>
    %39 = math.absf %38 : vector<1x4x15x16xf32>
    %40 = vector.shape_cast %39 : vector<1x4x15x16xf32> to vector<1x1x4x15x16xf32>
    %cst_20 = arith.constant dense<0.000000e+00> : vector<1xf32>
    %41 = vector.multi_reduction <add>, %40, %cst_20 [1, 2, 3, 4] : vector<1x1x4x15x16xf32> to vector<1xf32>
    %42 = vector.shape_cast %41 : vector<1xf32> to vector<1x1x1x1x1xf32>
    %43 = vector.extract %42[0, 0, 0, 0, 0] : f32 from vector<1x1x1x1x1xf32>
    %44 = tpu.iota {dimensions = array<i32: 0>} : vector<8x128xi32>
    %c0_i32 = arith.constant 0 : i32
    %45 = vector.broadcast %c0_i32 : i32 to vector<8x128xi32>
    %46 = arith.cmpi eq, %44, %45 : vector<8x128xi32>
    %c1_i32 = arith.constant 1 : i32
    %47 = vector.broadcast %c1_i32 : i32 to vector<8x128xi32>
    %48 = arith.cmpi eq, %44, %47 : vector<8x128xi32>
    %c2_i32 = arith.constant 2 : i32
    %49 = vector.broadcast %c2_i32 : i32 to vector<8x128xi32>
    %50 = arith.cmpi eq, %44, %49 : vector<8x128xi32>
    %c3_i32 = arith.constant 3 : i32
    %51 = vector.broadcast %c3_i32 : i32 to vector<8x128xi32>
    %52 = arith.cmpi eq, %44, %51 : vector<8x128xi32>
    %cst_21 = arith.constant 0.000000e+00 : f32
    %53 = vector.broadcast %43 : f32 to vector<8x128xf32>
    %54 = vector.broadcast %cst_21 : f32 to vector<8x128xf32>
    %55 = arith.select %52, %53, %54 : vector<8x128xi1>, vector<8x128xf32>
    %56 = vector.broadcast %35 : f32 to vector<8x128xf32>
    %57 = arith.select %50, %56, %55 : vector<8x128xi1>, vector<8x128xf32>
    %58 = vector.broadcast %25 : f32 to vector<8x128xf32>
    %59 = arith.select %48, %58, %57 : vector<8x128xi1>, vector<8x128xf32>
    %60 = vector.broadcast %18 : f32 to vector<8x128xf32>
    %61 = arith.select %46, %60, %59 : vector<8x128xi1>, vector<8x128xf32>
    %c0_22 = arith.constant 0 : index
    %c0_23 = arith.constant 0 : index
    %c0_24 = arith.constant 0 : index
    %c0_25 = arith.constant 0 : index
    %62 = vector.load %arg5[%c0_22, %c0_23, %c0_24, %c0_25] : memref<1x1x8x128xf32, #tpu.memory_space<vmem>>, vector<1x1x8x128xf32>
    %63 = vector.shape_cast %62 : vector<1x1x8x128xf32> to vector<8x128xf32>
    %64 = vector.shape_cast %61 : vector<8x128xf32> to vector<1x1x8x128xf32>
    tpu.vector_store %arg5[%c0_22, %c0_23, %c0_24, %c0_25], %64 {strides = array<i32>} : memref<1x1x8x128xf32, #tpu.memory_space<vmem>>, vector<1x1x8x128xf32>,
    return
  }
  func.func @transform_0(%arg0: i32, %arg1: i32) -> (i32, i32, i32, i32, i32) {
    %c1_i32 = arith.constant 1 : i32
    %c0_i32 = arith.constant 0 : i32
    %c0_i32_0 = arith.constant 0 : i32
    %c0_i32_1 = arith.constant 0 : i32
    return %arg0, %c1_i32, %arg1, %c0_i32, %c0_i32_0 : i32, i32, i32, i32, i32
  }
  func.func @transform_1(%arg0: i32, %arg1: i32) -> (i32, i32, i32, i32, i32) {
    %c1_i32 = arith.constant 1 : i32
    %c0_i32 = arith.constant 0 : i32
    %c0_i32_0 = arith.constant 0 : i32
    %c0_i32_1 = arith.constant 0 : i32
    return %arg0, %c1_i32, %arg1, %c0_i32, %c0_i32_0 : i32, i32, i32, i32, i32
  }
  func.func @transform_2(%arg0: i32, %arg1: i32) -> (i32, i32, i32, i32, i32) {
    %c1_i32 = arith.constant 1 : i32
    %c0_i32 = arith.constant 0 : i32
    %c0_i32_0 = arith.constant 0 : i32
    %c0_i32_1 = arith.constant 0 : i32
    return %arg0, %c1_i32, %arg1, %c0_i32, %c0_i32_0 : i32, i32, i32, i32, i32
  }
  func.func @transform_3(%arg0: i32, %arg1: i32) -> (i32, i32, i32, i32) {
    %c0_i32 = arith.constant 0 : i32
    %c0_i32_0 = arith.constant 0 : i32
    %c0_i32_1 = arith.constant 0 : i32
    return %arg0, %arg1, %c0_i32, %c0_i32_0 : i32, i32, i32, i32
  }
}

</mosaic_0001>

<bundles_post_ra>
// kernel: tpu_custom_call.1
= control target key start
LH: loop header
LB: loop body
LE: loop exit
PB: predicated region body
PF: predicated region fallthrough
CT: control target
= control target key end

     0   :  { %s1535_s0 = inlined_call_operand.hbm [shape: f32[2,2,4,16,16], index: 0, kind: input, shape index: {}]   ;;  %s1536_s1 = inlined_call_operand.hbm [shape: f32[2,2,4,16,16], index: 1, kind: input, shape index: {}]   ;;  %s1537_s2 = inlined_call_operand.hbm [shape: f32[2,2,4,16,16], index: 2, kind: input, shape index: {}]   ;;  %s1538_s3 = inlined_call_operand.hbm [shape: f32[2,1,8,128], index: 3, kind: output, shape index: {}]  }
   0x1   :  { %1548 = sst [smem:[#allocation14_spill]] %s1535_s0 }
   0x2   :  { %1549 = sst [smem:[#allocation15_spill]] %s1536_s1 }
   0x3   :  { %8 = vsyncpa [#allocation3], 0 }
   0x4   :  { %10 = vsyncpa [#allocation3 + $0x1], 0 }
   0x5   :  { %11 = vsyncpa [#allocation6], 0 }
   0x6   :  { %13 = vsyncpa [#allocation6 + $0x1], 0 }
   0x7   :  { %14 = vsyncpa [#allocation4], 0 }
   0x8   :  { %16 = vsyncpa [#allocation4 + $0x1], 0  ;;  %s1069_s12 = smov 0   ;;  %s1071_s13 = smov 0  }
   0x9   :  { %s1073_s14 = smov 0   ;;  %s1075_s15 = smov 0  }
   0xa   :  { %s1077_s16 = smov 0   ;;  %s1079_s17 = smov 0  }
   0xb LB: > { %1550 = sst [smem:[#allocation12_spill]] %s1036_s16  ;;  %s1100_s18 = sadd.s32 4294967295, %s1040_s17   ;;  %s1040_s17 = sphi %s1079_s17, %s22_s17   ;;  %s1036_s16 = sphi %s1077_s16, %s1571_s16   ;;  %s1032_s15 = sphi %s1075_s15, %s1570_s15   ;;  %s1028_s14 = sphi %s1073_s14, %s1574_s14   ;;  %s1024_s13 = sphi %s1071_s13, %s1573_s13   ;;  %s1020_s12 = sphi %s1069_s12, %s1572_s12  }
   0xc   : > { %s754_s19 = sadd.s32 4294967294, %s1040_s17   ;;  %s34_s20 = sadd.s32 1, %s1036_s16 }
   0xd   : > { %s43_s21 = sadd.s32 1, %s1028_s14  ;;  %p36_p0 = scmp.ge.s32.totalorder %s34_s20, 2 }
   0xe   : > { %p50_p1 = scmp.ne.s32.totalorder %s1028_s14, %s1024_s13  ;;  %p51_p2 = scmp.eq.s32.totalorder %s1040_s17, 0 }
   0xf   : > { %p56_p3 = scmp.ne.s32.totalorder %s1024_s13, %s1020_s12  ;;  %s1576_s20 = smov (%p36_p0, %s34_s20), 0 }
  0x10   : > { %1551 = sst [smem:[#allocation13_spill]] %s1576_s20  ;;  %p1112_p4 = por %p51_p2, %p50_p1 }
  0x11   : > { %p57_p5 = scmp.eq.s32.totalorder %s1100_s18, 0  ;;  %s38_s23 = ssub.s32 %s1036_s16, %s1576_s20 }
  0x12   : > { %p138_p6 = scmp.eq.s32.totalorder %s1100_s18, 1  ;;  %p41_p7 = scmp.eq.s32.totalorder %s38_s23, 0 }
  0x13   : > { %p1120_p8 = por %p57_p5, %p56_p3  ;;  %p144_p10 = scmp.eq.s32.totalorder %s754_s19, 1 }
  0x14   : > { %p1124_p9 = por %p138_p6, %p50_p1  ;;  %p808_p13 = scmp.lt.s32.totalorder %s1040_s17, 2 }
  0x15   : > { %s1553_s24 = scalar_select %p1120_p8, 1, 0 }
  0x16   : > { %s1554_s25 = scalar_select %p1124_p9, 1, 0 }
  0x17   : > { %s1129_s26 = scalar_select %p41_p7, %s1028_s14, %s43_s21  }
  0x18   : > { %p1131_p11 = por %p144_p10, %p56_p3  ;;  %s1539_s28 = sand.u32 1, %s1028_s14  }
  0x19   : > { %s1140_s29 = sshll.u32 %s1539_s28, 6  ;;  %s1143_s30 = sshll.u32 %s1036_s16, 11 }
  0x1a   : > { %s1555_s27 = scalar_select %p1131_p11, 1, 0 }
  0x1b   : > { %p1147_p0 = pnand %p808_p13, %p1112_p4  ;;  %s189_s5 = sand.u32 1, %s1040_s17  }
  0x1c   : > { %s1557_s1 = sld [smem:[#allocation15_spill]]  ;;  %s193_s10 = scalar_lea.vmem [#allocation5], %s1140_s29 }
  0x1d   : > { %s204_s11 = sshll.u32 %s193_s10, 4  ;;  %s1162_s19 = scalar_lea.sflag [#allocation6], %s189_s5  ;;  %s1159_s11 = int_to_ptr.vmem [resolvable:$true] %s204_s11 }
  0x1e   : > { %p1167_p3 = pneg %p1147_p0 }
  0x22   : > { %s662_s8 = scalar_lea.hbm %s1557_s1, %s1143_s30  ;;  %s866_s7 = scalar_lea.hbm %s1557_s1, 4096 }
  0x23   : > { %s1156_s9 = scalar_lea.hbm %s662_s8, 1024  ;;  %s891_s21 = scalar_lea.hbm %s662_s8, 2048 }
  0x24   : > { %p862_p2 = scmp.ne.s32.totalorder %s1156_s9, %s891_s21  ;;  %p867_p6 = scmp.lt.u32.totalorder %s1156_s9, %s1557_s1 }
  0x25   : > { %p868_p7 = scmp.lt.u32.totalorder %s866_s7, %s891_s21  ;;  %p870_p13 = scmp.lt.u32.totalorder %s891_s21, %s1156_s9 }
  0x26   : > { %p864_p4 = pnand %p1167_p3, %p862_p2 }
  0x27   : > { %p869_p10 = por %p868_p7, %p867_p6 }
  0x28   : > { %p865_p5 = pneg %p864_p4 }
  0x29   : > { %p871_p12 = por %p870_p13, %p869_p10 }
  0x2b   : > { %p872_p1 = pnand %p871_p12, %p865_p5 }
  0x2d   : > { %875 = shalt.err (!%p872_p1)
}
  0x2e   : > { %s876_s5 = scalar_lea.vmem %s1159_s11, 1024  ;;  %s1042_s8 = smov [#allocation5]  }
  0x2f   : > { %p877_p2 = scmp.ne.s32.totalorder %s1159_s11, %s876_s5  ;;  %s881_s23 = sshll.u32 %s1042_s8, 4  ;;  %s882_s23 = int_to_ptr.vmem [resolvable:$false] %s881_s23 }
  0x30   : > { %s883_s28 = scalar_lea.vmem %s882_s23, 2048  ;;  %p884_p9 = scmp.lt.s32.totalorder %s1159_s11, %s882_s23 }
  0x31   : > { %p879_p4 = pnand %p877_p2, %p1167_p3  ;;  %p885_p8 = scmp.lt.s32.totalorder %s883_s28, %s876_s5 }
  0x33   : > { %p880_p11 = pneg %p879_p4  ;;  %p886_p6 = por %p885_p8, %p884_p9 }
  0x35   : > { %p887_p7 = pnand %p886_p6, %p880_p11 }
  0x37   : > { %890 = shalt.err (!%p887_p7)
}
  0x38   : > { %s1542_s21 = smov 128   ;;  %s1544_s6 = smov 8  }
  0x39   : > { %800 = dma.hbm_to_vmem [thread:$0]  (!%p1147_p0), %s1156_s9, 1024, %s1159_s11, %s1162_s19, %s1542_s21, %s1542_s21, %s1544_s6  }
  0x3a   : > { %p237_p8 = scmp.lt.s32.totalorder %s1040_s17, 3  ;;  %p1559_p9 = scmp.ge.s32.totalorder %s1040_s17, 1 }
  0x3b   : > { %s1561_s0 = sld [smem:[#allocation14_spill]]  ;;  %s168_s23 = scalar_lea.vmem [#allocation2], %s1140_s29 }
  0x3c   : > { %p1197_p11 = pnand %p1559_p9, %p237_p8  ;;  %s179_s28 = sshll.u32 %s168_s23, 4  ;;  %s1208_s28 = int_to_ptr.vmem [resolvable:$true] %s179_s28 }
  0x3d   : > { %s1562_s9 = sand.u32 1, %s1028_s14  }
  0x3e   : > { %s1560_s7 = scalar_select %p1197_p11, 1, 0 }
  0x3f   : > { %s1212_s11 = scalar_lea.sflag [#allocation3], %s1562_s9 }
  0x41   : > { %s653_s8 = scalar_lea.hbm %s1561_s0, %s1143_s30  ;;  %s897_s5 = scalar_lea.hbm %s1561_s0, 4096 }
  0x42   : > { %s1206_s1 = scalar_lea.hbm %s653_s8, 1024  ;;  %s922_s21 = scalar_lea.hbm %s653_s8, 2048 }
  0x43   : > { %p893_p12 = scmp.ne.s32.totalorder %s1206_s1, %s922_s21  ;;  %p898_p10 = scmp.lt.u32.totalorder %s1206_s1, %s1561_s0 }
  0x44   : > { %p899_p13 = scmp.lt.u32.totalorder %s897_s5, %s922_s21  ;;  %p901_p4 = scmp.lt.u32.totalorder %s922_s21, %s1206_s1 }
  0x45   : > { %p895_p1 = pnand %p893_p12, %p1167_p3 }
  0x46   : > { %p900_p2 = por %p899_p13, %p898_p10 }
  0x47   : > { %p896_p5 = pneg %p895_p1 }
  0x48   : > { %p902_p6 = por %p901_p4, %p900_p2 }
  0x4a   : > { %p903_p7 = pnand %p902_p6, %p896_p5 }
  0x4c   : > { %906 = shalt.err (!%p903_p7)
}
  0x4d   : > { %s907_s8 = scalar_lea.vmem %s1208_s28, 1024  ;;  %s1045_s6 = smov [#allocation2]  }
  0x4e   : > { %p908_p8 = scmp.ne.s32.totalorder %s1208_s28, %s907_s8  ;;  %s912_s9 = sshll.u32 %s1045_s6, 4  ;;  %s913_s9 = int_to_ptr.vmem [resolvable:$false] %s912_s9 }
  0x4f   : > { %s914_s20 = scalar_lea.vmem %s913_s9, 2048  ;;  %p915_p1 = scmp.lt.s32.totalorder %s1208_s28, %s913_s9 }
  0x50   : > { %p910_p9 = pnand %p908_p8, %p1167_p3  ;;  %p916_p11 = scmp.lt.s32.totalorder %s914_s20, %s907_s8 }
  0x52   : > { %p911_p12 = pneg %p910_p9  ;;  %p917_p10 = por %p916_p11, %p915_p1 }
  0x54   : > { %p918_p13 = pnand %p917_p10, %p911_p12 }
  0x56   : > { %921 = shalt.err (!%p918_p13)
}
  0x57   : > { %s1563_s21 = smov 8   ;;  %s1564_s10 = smov 128  }
  0x58   : > { %797 = dma.hbm_to_vmem [thread:$0]  (!%p1147_p0), %s1206_s1, 1024, %s1208_s28, %s1212_s11, %s1564_s10, %s1564_s10, %s1563_s21  }
  0x59   : > { %s671_s6 = scalar_lea.hbm %s1537_s2, %s1143_s30  ;;  %s218_s9 = scalar_lea.vmem [#allocation7], %s1140_s29 }
  0x5a   : > { %s1242_s8 = scalar_lea.hbm %s671_s6, 1024  ;;  %s229_s20 = sshll.u32 %s218_s9, 4  ;;  %s1245_s20 = int_to_ptr.vmem [resolvable:$true] %s229_s20 }
  0x5b   : > { %s953_s0 = scalar_lea.hbm %s671_s6, 2048  ;;  %s928_s28 = scalar_lea.hbm %s1537_s2, 4096 }
  0x5c   : > { %p924_p11 = scmp.ne.s32.totalorder %s1242_s8, %s953_s0  ;;  %p929_p4 = scmp.lt.u32.totalorder %s1242_s8, %s1537_s2 }
  0x5d   : > { %p930_p6 = scmp.lt.u32.totalorder %s928_s28, %s953_s0  ;;  %p932_p8 = scmp.lt.u32.totalorder %s953_s0, %s1242_s8 }
  0x5e   : > { %p926_p5 = pnand %p924_p11, %p1167_p3 }
  0x5f   : > { %p931_p7 = por %p930_p6, %p929_p4 }
  0x60   : > { %p927_p2 = pneg %p926_p5 }
  0x61   : > { %p933_p9 = por %p932_p8, %p931_p7 }
  0x63   : > { %p934_p12 = pnand %p933_p9, %p927_p2 }
  0x65   : > { %937 = shalt.err (!%p934_p12)
}
  0x66   : > { %s938_s29 = scalar_lea.vmem %s1245_s20, 1024  ;;  %s1046_s16 = smov [#allocation7]  }
  0x67   : > { %p939_p1 = scmp.ne.s32.totalorder %s1245_s20, %s938_s29  ;;  %s943_s5 = sshll.u32 %s1046_s16, 4  ;;  %s944_s5 = int_to_ptr.vmem [resolvable:$false] %s943_s5 }
  0x68   : > { %s945_s23 = scalar_lea.vmem %s944_s5, 2048  ;;  %p946_p11 = scmp.lt.s32.totalorder %s1245_s20, %s944_s5 }
  0x69   : > { %p941_p10 = pnand %p939_p1, %p1167_p3  ;;  %p947_p5 = scmp.lt.s32.totalorder %s945_s23, %s938_s29 }
  0x6b   : > { %p942_p13 = pneg %p941_p10  ;;  %p948_p4 = por %p947_p5, %p946_p11 }
  0x6d   : > { %p949_p6 = pnand %p948_p4, %p942_p13 }
  0x6f   : > { %952 = shalt.err (!%p949_p6)
}
  0x70   : > { %803 = dma.hbm_to_vmem [thread:$0]  (!%p1147_p0), %s1242_s8, 1024, %s1245_s20, %s1162_s19, %s1564_s10, %s1564_s10, %s1563_s21  }
  0x71   : > { %p1565_p3 = scmp.ne.s32.totalorder %s1560_s7, 0 }
  0x72   : > { %s1274_s0 = sand.u32 (!%p1565_p3), 1, %s1024_s13   ;;  %p1566_p2 = scmp.ne.s32.totalorder (!%p1565_p3), %s1553_s24, 0 }
  0x73   : > { %241 = sbr.rel (%p1565_p3) target bundleno = 502 (0x1f6), region = 32  ;;  %s767_s22 = sshll.u32 (!%p1565_p3), %s1274_s0, 6 }
  0x74   : > { %s244_s6 = scalar_lea.sflag (!%p1565_p3), [#allocation3], %s1274_s0  ;;  %s1278_s9 = scalar_lea.vmem (!%p1565_p3), [#allocation2], %s767_s22 }
  0x7a   : > { %1007 = dma.done.wait (%p1566_p2), %s244_s6, 1024  }
  0x7b   : > { %1009 = vsyncadd (%p1566_p2), %s244_s6, 4294966272  ;;  %s252_s4 = sand.u32 1, %s1100_s18   ;;  %s1285_s7 = scalar_lea.vmem [#allocation5], %s767_s22 }
  0x7c   : > { %s253_s19 = scalar_lea.sflag [#allocation6], %s252_s4 }
  0x7d   : > { %1011 = dma.done.wait (%p1566_p2), %s253_s19, 2048  }
  0x7e   : > { %1013 = vsyncadd (%p1566_p2), %s253_s19, 4294965248  ;;  %v301_v0 = vld [vmem:[%s1278_s9] sm:$0xff]  ;;  %s1293_s21 = scalar_lea.vmem [#allocation7], %s767_s22  ;;  %v303_v4 = vld [vmem:[%s1278_s9 + $0x10] sm:$0xff]  ;;  %s1047_s18 = smov 127   ;;  %vm373_vm0 = vcmask 130048  }
  0x7f   : > { %v333_v1 = vld [vmem:[%s1285_s7] sm:$0xff]  ;;  %v309_v3 = vmul.f32 2.0, %v301_v0  ;;  %v335_v5 = vld [vmem:[%s1285_s7 + $0x10] sm:$0xff]  ;;  %v311_v7 = vmul.f32 2.0, %v303_v4  ;;  %v302_v8 = vld [vmem:[%s1278_s9 + $0x8] sm:$0xff]  ;;  %vm527_vm1 = vcmask 1046528  }
  0x80   : > { %v341_v2 = vld [vmem:[%s1293_s21] sm:$0xff]  ;;  %v343_v6 = vld [vmem:[%s1293_s21 + $0x10] sm:$0xff]  ;;  %v310_v11 = vmul.f32 2.0, %v302_v8  ;;  %v334_v12 = vld [vmem:[%s1285_s7 + $0x8] sm:$0xff]  ;;  %vm565_vm2 = vcmask 129024   ;;  %vm502_vm3 = vcmask 121856  }
  0x81   : > { %v317_v9 = vmax.f32 %v309_v3, 0.0  ;;  %v1300_v10 = vsub.f32 %v341_v2, %v333_v1  ;;  %v342_v13 = vld [vmem:[%s1293_s21 + $0x8] sm:$0xff]  ;;  %v304_v14 = vld [vmem:[%s1278_s9 + $0x18] sm:$0xff]  ;;  %v319_v15 = vmax.f32 %v311_v7, 0.0  ;;  %v1305_v16 = vsub.f32 %v343_v6, %v335_v5  ;;  %v305_v20 = vld [vmem:[%s1278_s9 + $0x20] sm:$0xff]  ;;  %s770_s24 = sshll.u32 %s1274_s0, 3 }
  0x82   : > { %v312_v17 = vmul.f32 2.0, %v304_v14  ;;  %v336_v18 = vld [vmem:[%s1285_s7 + $0x18] sm:$0xff]  ;;  %v318_v22 = vmax.f32 %v310_v11, 0.0  ;;  %v1314_v24 = vsub.f32 %v342_v13, %v334_v12  ;;  %v313_v29 = vmul.f32 2.0, %v305_v20  ;;  %v337_v32 = vld [vmem:[%s1285_s7 + $0x20] sm:$0xff]  ;;  %v306_v35 = vld [vmem:[%s1278_s9 + $0x28] sm:$0xff] }
  0x83   : > { %v344_v19 = vld [vmem:[%s1293_s21 + $0x18] sm:$0xff]  ;;  %v1310_v21 = vmin.f32 %v317_v9, 1.0  ;;  %v1312_v23 = vmin.f32 %v319_v15, 1.0  ;;  %v345_v33 = vld [vmem:[%s1293_s21 + $0x20] sm:$0xff]  ;;  %v307_v38 = vld [vmem:[%s1278_s9 + $0x30] sm:$0xff]  ;;  %v314_v46 = vmul.f32 2.0, %v306_v35 }
  0x84   : > { %v320_v25 = vmax.f32 %v312_v17, 0.0  ;;  %v1318_v27 = vmin.f32 %v318_v22, 1.0  ;;  %v1320_v28 = vsub.f32 %v344_v19, %v336_v18  ;;  %v321_v40 = vmax.f32 %v313_v29, 0.0  ;;  %v338_v42 = vld [vmem:[%s1285_s7 + $0x28] sm:$0xff]  ;;  %v308_v44 = vld [vmem:[%s1278_s9 + $0x38] sm:$0xff]  ;;  %v339_v47 = vld [vmem:[%s1285_s7 + $0x30] sm:$0xff] }
  0x85   : > { %v438_v26 = vmul.f32 %v1300_v10, %v1310_v21  ;;  %v440_v30 = vmul.f32 %v1305_v16, %v1312_v23  ;;  %v1340_v41 = vsub.f32 %v345_v33, %v337_v32  ;;  %v346_v43 = vld [vmem:[%s1293_s21 + $0x28] sm:$0xff]  ;;  %v347_v48 = vld [vmem:[%s1293_s21 + $0x30] sm:$0xff]  ;;  %v315_v51 = vmul.f32 2.0, %v307_v38  ;;  %v340_v52 = vld [vmem:[%s1285_s7 + $0x38] sm:$0xff]  ;;  %s772_s28 = sshll.u32 %s1032_s15, 7  ;;  %s297_s11 = scalar_lea.vmem [#allocation8], %s770_s24 }
  0x86   : > { %v1324_v31 = vmin.f32 %v320_v25, 1.0  ;;  %v439_v37 = vmul.f32 %v1314_v24, %v1318_v27  ;;  %v1353_v50 = vmin.f32 %v321_v40, 1.0  ;;  %v348_v53 = vld [vmem:[%s1293_s21 + $0x38] sm:$0xff]  ;;  %v357_v54 = vand.u32 2147483647, %v1300_v10  ;;  %s619_s30 = sshll.u32 %s297_s11, 4  ;;  %s1486_s5 = scalar_lea.hbm %s1538_s3, %s772_s28  ;;  %s1488_s30 = int_to_ptr.vmem [resolvable:$true] %s619_s30 }
  0x87   : > { %v1328_v34 = vadd.f32 %v438_v26, %v333_v1  ;;  %v1331_v36 = vadd.f32 %v440_v30, %v335_v5  ;;  %v322_v55 = vmax.f32 %v314_v46, 0.0  ;;  %v1358_v56 = vsub.f32 %v346_v43, %v338_v42  ;;  %s605_s15 = scalar_lea.sflag [#allocation4], %s1274_s0  ;;  %s954_s23 = scalar_lea.vmem %s1488_s30, 128 }
  0x88   : > { %v441_v39 = vmul.f32 %v1320_v28, %v1324_v31  ;;  %v1347_v45 = vadd.f32 %v439_v37, %v334_v12  ;;  %v316_v57 = vmul.f32 2.0, %v308_v44  ;;  %v358_v58 = vand.u32 2147483647, %v1314_v24  ;;  %p955_p0 = scmp.ne.s32.totalorder %s1488_s30, %s954_s23  ;;  %p1567_p7 = scmp.ne.s32.totalorder %s1554_s25, 0 }
  0x89   : > { %462 = vrot.lane.b32.xlu0 %v1328_v34, %s1047_s18  ;;  %466 = vrot.lane.b32.xlu1 %v1331_v36, %s1047_s18  ;;  %v442_v59 = vmul.f32 %v1340_v41, %v1353_v50  ;;  %v323_v60 = vmax.f32 %v315_v51, 0.0  ;;  %v1365_v61 = vsub.f32 %v347_v48, %v339_v47  ;;  %v1369_v62 = vmin.f32 %v322_v55, 1.0  ;;  %s1048_s22 = smov [#allocation8]  }
  0x8a   : > { %v1351_v49 = vadd.f32 %v441_v39, %v336_v18  ;;  %v324_v63 = vmax.f32 %v316_v57, 0.0  ;;  %v1371_v0 = vsub.f32 %v348_v53, %v340_v52  ;;  %v359_v3 = vand.u32 2147483647, %v1305_v16  ;;  %p956_p8 = pnand %p955_p0, %p1567_p7  ;;  %s958_s6 = sshll.u32 %s1048_s22, 4  ;;  %s959_s6 = int_to_ptr.vmem [resolvable:$false] %s958_s6 }
  0x8b   : > { %v1373_v1 = vadd.f32 %v442_v59, %v337_v32  ;;  %v1375_v2 = vmin.f32 %v323_v60, 1.0  ;;  %v443_v4 = vmul.f32 %v1358_v56, %v1369_v62  ;;  %v365_v6 = vmul.f32 %v357_v54, %v1310_v21  ;;  %s960_s9 = scalar_lea.vmem %s959_s6, 256  ;;  %p961_p12 = scmp.lt.s32.totalorder %s1488_s30, %s959_s6 }
  0x8c   : > { %v1380_v5 = vmin.f32 %v324_v63, 1.0  ;;  %v366_v7 = vmul.f32 %v358_v58, %v1318_v27  ;;  %v398_v12 = vsub.f32 1.0, %v1310_v21  ;;  %v367_v13 = vmul.f32 %v359_v3, %v1312_v23  ;;  %p957_p9 = pneg %p956_p8  ;;  %p962_p1 = scmp.lt.s32.totalorder %s960_s9, %s954_s23 }
  0x8d   : > { %464 = vrot.lane.b32.xlu0 %v1347_v45, %s1047_s18  ;;  %468 = vrot.lane.b32.xlu1 %v1351_v49, %s1047_s18  ;;  %v444_v8 = vmul.f32 %v1365_v61, %v1375_v2  ;;  %v1388_v9 = vadd.f32 %v443_v4, %v338_v42  ;;  %v399_v15 = vsub.f32 1.0, %v1318_v27  ;;  %v360_v16 = vand.u32 2147483647, %v1320_v28 }
  0x8e   : > { %v445_v10 = vmul.f32 %v1371_v0, %v1380_v5  ;;  %v374_v17 = vsel %vm373_vm0, %v365_v6, 0.0  ;;  %v375_v18 = vsel %vm373_vm0, %v366_v7, 0.0  ;;  %v400_v19 = vsub.f32 1.0, %v1312_v23  ;;  %p963_p10 = por %p962_p1, %p961_p12 }
  0x8f   : > { %v1392_v11 = vadd.f32 %v444_v8, %v339_v47  ;;  %v361_v20 = vand.u32 2147483647, %v1340_v41  ;;  %v376_v21 = vadd.f32 %v375_v18, %v374_v17  ;;  %v406_v22 = vmul.f32 %v398_v12, %v357_v54 }
  0x90   : > { %v1398_v14 = vadd.f32 %v445_v10, %v340_v52  ;;  %v407_v24 = vmul.f32 %v399_v15, %v358_v58  ;;  %v368_v25 = vmul.f32 %v360_v16, %v1324_v31  ;;  %v377_v26 = vsel %vm373_vm0, %v367_v13, 0.0  ;;  %p964_p13 = pnand %p963_p10, %p957_p9 }
  0x91   : > { %470 = vrot.lane.b32.xlu0 %v1373_v1, %s1047_s18  ;;  %472 = vrot.lane.b32.xlu1 %v1388_v9, %s1047_s18  ;;  %v408_v27 = vmul.f32 %v400_v19, %v359_v3  ;;  %v362_v28 = vand.u32 2147483647, %v1358_v56  ;;  %v369_v29 = vmul.f32 %v361_v20, %v1353_v50  ;;  %v378_v30 = vadd.f32 %v377_v26, %v376_v21 }
  0x92   : > { %v379_v23 = vsel %vm373_vm0, %v368_v25, 0.0  ;;  %v401_v32 = vsub.f32 1.0, %v1324_v31  ;;  %v414_v33 = vsel %vm373_vm0, %v406_v22, 0.0  ;;  %v415_v35 = vsel %vm373_vm0, %v407_v24, 0.0 }
  0x93   : > { %v363_v37 = vand.u32 2147483647, %v1365_v61  ;;  %v370_v38 = vmul.f32 %v362_v28, %v1369_v62  ;;  %v380_v39 = vadd.f32 %v379_v23, %v378_v30  ;;  %v416_v40 = vadd.f32 %v415_v35, %v414_v33 }
  0x94   : > { %v381_v41 = vsel %vm373_vm0, %v369_v29, 0.0  ;;  %v402_v42 = vsub.f32 1.0, %v1353_v50  ;;  %v409_v43 = vmul.f32 %v401_v32, %v360_v16  ;;  %v417_v44 = vsel %vm373_vm0, %v408_v27, 0.0 }
  0x95   : > { %474 = vrot.lane.b32.xlu0 %v1392_v11, %s1047_s18  ;;  %476 = vrot.lane.b32.xlu1 %v1398_v14, %s1047_s18  ;;  %v364_v46 = vand.u32 2147483647, %v1371_v0  ;;  %v371_v31 = vmul.f32 %v363_v37, %v1375_v2  ;;  %v382_v47 = vadd.f32 %v381_v41, %v380_v39  ;;  %v418_v48 = vadd.f32 %v417_v44, %v416_v40 }
  0x96   : > { %v383_v51 = vsel %vm373_vm0, %v370_v38, 0.0  ;;  %v403_v52 = vsub.f32 1.0, %v1369_v62  ;;  %v410_v53 = vmul.f32 %v402_v42, %v361_v20  ;;  %v419_v54 = vsel %vm373_vm0, %v409_v43, 0.0 }
  0x97   : > { %v372_v55 = vmul.f32 %v364_v46, %v1380_v5  ;;  %v384_v56 = vadd.f32 %v383_v51, %v382_v47  ;;  %v420_v50 = vadd.f32 %v419_v54, %v418_v48  ;;  %v385_v57 = vsel %vm373_vm0, %v371_v31, 0.0 }
  0x98   : > { %v404_v58 = vsub.f32 1.0, %v1375_v2  ;;  %v411_v59 = vmul.f32 %v403_v52, %v362_v28  ;;  %v421_v60 = vsel %vm373_vm0, %v410_v53, 0.0  ;;  %v405_v62 = vsub.f32 1.0, %v1380_v5 }
  0x99   : > { %v386_v61 = vadd.f32 %v385_v57, %v384_v56  ;;  %v422_v63 = vadd.f32 %v421_v60, %v420_v50  ;;  %v387_v0 = vsel %vm373_vm0, %v372_v55, 0.0  ;;  %v528_v15 = vrot.slane %v1328_v34, 1 }
  0x9a   : > { %v412_v3 = vmul.f32 %v404_v58, %v363_v37  ;;  %v423_v4 = vsel %vm373_vm0, %v411_v59, 0.0  ;;  %v413_v8 = vmul.f32 %v405_v62, %v364_v46  ;;  %v529_v16 = vrot.slane %v1347_v45, 1 }
  0x9b   : > { %v388_v6 = vadd.f32 %v387_v0, %v386_v61  ;;  %v424_v7 = vadd.f32 %v423_v4, %v422_v63  ;;  %v531_v5 = vrot.slane %v1331_v36, 1  ;;  %v532_v18 = vrot.slane %v1351_v49, 1 }
  0x9c   : > { %v425_v10 = vsel %vm373_vm0, %v412_v3, 0.0  ;;  %v427_v2 = vsel %vm373_vm0, %v413_v8, 0.0  ;;  %v530_v17 = vsel %vm527_vm1, %v528_v15, %v529_v16  ;;  %v549_v20 = vsub.f32 %v1347_v45, %v529_v16 }
  0x9d   : > { %v426_v12 = vadd.f32 %v425_v10, %v424_v7  ;;  %v548_v19 = vsub.f32 %v1328_v34, %v530_v17  ;;  %v533_v21 = vsel %vm527_vm1, %v531_v5, %v532_v18  ;;  %v534_v26 = vrot.slane %v1373_v1, 1 }
  0x9e   : > { %v550_v22 = vsub.f32 %v1331_v36, %v533_v21  ;;  %v557_v25 = vand.u32 2147483647, %v549_v20  ;;  %v535_v27 = vrot.slane %v1388_v9, 1  ;;  %v551_v28 = vsub.f32 %v1351_v49, %v532_v18 }
  0x9f   : > { %v428_v13 = vadd.f32 %v427_v2, %v426_v12  ;;  %v556_v24 = vand.u32 2147483647, %v548_v19  ;;  %v537_v35 = vrot.slane %v1392_v11, 1  ;;  %v538_v37 = vrot.slane %v1398_v14, 1 }
  0xa0   : > { %v558_v29 = vand.u32 2147483647, %v550_v22  ;;  %v566_v23 = vsel %vm565_vm2, %v557_v25, 0.0  ;;  %v536_v32 = vsel %vm527_vm1, %v534_v26, %v535_v27  ;;  %v559_v42 = vand.u32 2147483647, %v551_v28 }
  0xa1   : > { %v564_v30 = vsel %vm373_vm0, %v556_v24, 0.0  ;;  %v552_v41 = vsub.f32 %v1373_v1, %v536_v32  ;;  %v539_v31 = vsel %vm527_vm1, %v537_v35, %v538_v37  ;;  %v553_v47 = vsub.f32 %v1388_v9, %v535_v27 }
  0xa2   : > { %v567_v38 = vadd.f32 %v566_v23, %v564_v30  ;;  %v568_v43 = vsel %vm373_vm0, %v558_v29, 0.0  ;;  %v554_v58 = vsub.f32 %v1392_v11, %v539_v31  ;;  %v555_v12 = vsub.f32 %v1398_v14, %v538_v37 }
  0xa3   : > { %v560_v54 = vand.u32 2147483647, %v552_v41  ;;  %v561_v59 = vand.u32 2147483647, %v553_v47 }
  0xa4   : > { %v569_v48 = vadd.f32 %v568_v43, %v567_v38  ;;  %v562_v15 = vand.u32 2147483647, %v554_v58  ;;  %v563_v25 = vand.u32 2147483647, %v555_v12 }
  0xa5   : > { %v572_v0 = vsel %vm373_vm0, %v560_v54, 0.0  ;;  %v574_v16 = vsel %vm565_vm2, %v561_v59, 0.0 }
  0xa6   : > { %v576_v26 = vsel %vm373_vm0, %v562_v15, 0.0  ;;  %v578_v23 = vsel %vm565_vm2, %v563_v25, 0.0 }
  0xb4   : > { %389 = vadd.xlane.f32.xlu0 %v388_v6 }
  0xb9   : > { %429 = vadd.xlane.f32.xlu1 %v428_v13 }
  0xfb   : > { %v463_v33 = vpop.permute.xlu0 %462  ;;  %v467_v40 = vpop.permute.xlu1 %466 }
  0xfc   : > { %v486_v39 = vsub.f32 %v1328_v34, %v463_v33  ;;  %v488_v44 = vsub.f32 %v1331_v36, %v467_v40  ;;  %v570_v34 = vsel %vm565_vm2, %v559_v42, 0.0 }
  0xfd   : > { %v571_v60 = vadd.f32 %v570_v34, %v569_v48 }
  0xfe   : > { %v494_v51 = vand.u32 2147483647, %v486_v39  ;;  %v496_v56 = vand.u32 2147483647, %v488_v44 }
  0xff   : > { %v465_v46 = vpop.permute.xlu0 %464  ;;  %v469_v53 = vpop.permute.xlu1 %468  ;;  %v573_v2 = vadd.f32 %v572_v0, %v571_v60 }
 0x100   : > { %v487_v52 = vsub.f32 %v1347_v45, %v465_v46  ;;  %v489_v55 = vsub.f32 %v1351_v49, %v469_v53  ;;  %v503_v61 = vsel %vm502_vm3, %v494_v51, 0.0  ;;  %v506_v3 = vsel %vm502_vm3, %v496_v56, 0.0 }
 0x101   : > { %v575_v22 = vadd.f32 %v574_v16, %v573_v2 }
 0x102   : > { %v495_v50 = vand.u32 2147483647, %v487_v52  ;;  %v497_v57 = vand.u32 2147483647, %v489_v55 }
 0x103   : > { %v471_v36 = vpop.permute.xlu0 %470  ;;  %v473_v6 = vpop.permute.xlu1 %472  ;;  %v577_v30 = vadd.f32 %v576_v26, %v575_v22 }
 0x104   : > { %v504_v63 = vsel %vm502_vm3, %v495_v50, 0.0  ;;  %v490_v45 = vsub.f32 %v1373_v1, %v471_v36  ;;  %v508_v49 = vsel %vm502_vm3, %v497_v57, 0.0  ;;  %v491_v8 = vsub.f32 %v1388_v9, %v473_v6 }
 0x105   : > { %v505_v62 = vadd.f32 %v504_v63, %v503_v61  ;;  %v579_v33 = vadd.f32 %v578_v23, %v577_v30  ;;  %v589_v63 = vlaneseq }
 0x106   : > { %v498_v4 = vand.u32 2147483647, %v490_v45  ;;  %v499_v17 = vand.u32 2147483647, %v491_v8 }
 0x107   : > { %v507_v7 = vadd.f32 %v506_v3, %v505_v62  ;;  %v475_v10 = vpop.permute.xlu0 %474  ;;  %v477_v19 = vpop.permute.xlu1 %476  ;;  %v590_v45 = vshrl.u32 %v589_v63, 7 }
 0x108   : > { %v510_v13 = vsel %vm502_vm3, %v498_v4, 0.0  ;;  %v492_v1 = vsub.f32 %v1392_v11, %v475_v10  ;;  %v512_v21 = vsel %vm502_vm3, %v499_v17, 0.0  ;;  %v493_v9 = vsub.f32 %v1398_v14, %v477_v19 }
 0x109   : > { %v509_v5 = vadd.f32 %v508_v49, %v507_v7  ;;  %vm594_vm4 = vcmp.eq.s32.totalorder %v590_v45, 3  ;;  %vm593_vm5 = vcmp.eq.s32.totalorder %v590_v45, 2  ;;  %vm592_vm6 = vcmp.eq.s32.totalorder %v590_v45, 1 }
 0x10a   : > { %v500_v18 = vand.u32 2147483647, %v492_v1  ;;  %v501_v11 = vand.u32 2147483647, %v493_v9  ;;  %vm591_vm7 = vcmp.eq.s32.totalorder %v590_v45, 0 }
 0x10b   : > { %v511_v20 = vadd.f32 %v510_v13, %v509_v5 }
 0x10c   : > { %v514_v24 = vsel %vm502_vm3, %v500_v18, 0.0  ;;  %v516_v29 = vsel %vm502_vm3, %v501_v11, 0.0 }
 0x10d   : > { %v513_v27 = vadd.f32 %v512_v21, %v511_v20 }
 0x10f   : > { %v515_v28 = vadd.f32 %v514_v24, %v513_v27 }
 0x111   : > { %v517_v32 = vadd.f32 %v516_v29, %v515_v28 }
 0x113   : > { %518 = vadd.xlane.f32.xlu0 %v517_v32 }
 0x117   : > { %580 = vadd.xlane.f32.xlu0 %v579_v33 }
 0x141   : > { %v390_v35 = vpop.xlane.xlu0 %389 }
 0x142   : > { %v391_v14 = vrot.slane %v390_v35, 4 }
 0x144   : > { %v392_v37 = vadd.f32 %v391_v14, %v390_v35 }
 0x146   : > { %v393_v38 = vrot.slane %v392_v37, 2  ;;  %v430_v40 = vpop.xlane.xlu1 %429 }
 0x147   : > { %v431_v41 = vrot.slane %v430_v40, 4 }
 0x148   : > { %v394_v39 = vadd.f32 %v393_v38, %v392_v37 }
 0x149   : > { %v432_v43 = vadd.f32 %v431_v41, %v430_v40 }
 0x14a   : > { %v395_v42 = vrot.slane %v394_v39, 1 }
 0x14b   : > { %v433_v46 = vrot.slane %v432_v43, 2 }
 0x14c   : > { %v396_v44 = vadd.f32 %v395_v42, %v394_v39 }
 0x14d   : > { %v434_v31 = vadd.f32 %v433_v46, %v432_v43 }
 0x14e   : > { %778 = vpush %v396_v44 }
 0x14f   : > { %v435_v47 = vrot.slane %v434_v31, 1 }
 0x151   : > { %v436_v48 = vadd.f32 %v435_v47, %v434_v31 }
 0x153   : > { %780 = vpush %v436_v48 }
 0x17f   : > { %s779_s10 = spop %778 }
 0x180   : > { %v601_v6 = vstv %s779_s10 }
 0x184   : > { %s781_s8 = spop %780 }
 0x185   : > { %v599_v49 = vstv %s781_s8 }
 0x1a0   : > { %v519_v51 = vpop.xlane.xlu0 %518 }
 0x1a1   : > { %v520_v52 = vrot.slane %v519_v51, 4 }
 0x1a3   : > { %v521_v53 = vadd.f32 %v520_v52, %v519_v51 }
 0x1a4   : > { %v581_v54 = vpop.xlane.xlu0 %580 }
 0x1a5   : > { %v522_v34 = vrot.slane %v521_v53, 2  ;;  %v582_v55 = vrot.slane %v581_v54, 4 }
 0x1a7   : > { %v583_v56 = vadd.f32 %v582_v55, %v581_v54  ;;  %v523_v50 = vadd.f32 %v522_v34, %v521_v53 }
 0x1a9   : > { %v584_v57 = vrot.slane %v583_v56, 2  ;;  %v524_v36 = vrot.slane %v523_v50, 1 }
 0x1ab   : > { %v585_v58 = vadd.f32 %v584_v57, %v583_v56  ;;  %v525_v59 = vadd.f32 %v524_v36, %v523_v50 }
 0x1ad   : > { %782 = vpush %v525_v59  ;;  %v586_v60 = vrot.slane %v585_v58, 1 }
 0x1af   : > { %v587_v61 = vadd.f32 %v586_v60, %v585_v58 }
 0x1b1   : > { %784 = vpush %v587_v61 }
 0x1de   : > { %s783_s20 = spop %782 }
 0x1df   : > { %v597_v62 = vstv %s783_s20 }
 0x1e2   : > { %s785_s1 = spop %784 }
 0x1e3   : > { %v595_v0 = vstv %s785_s1 }
 0x1e4   : > { %v596_v3 = vsel %vm594_vm4, %v595_v0, 0.0 }
 0x1e5   : > { %v598_v4 = vsel %vm593_vm5, %v597_v62, %v596_v3 }
 0x1e6   : > { %v600_v7 = vsel %vm592_vm6, %v599_v49, %v598_v4 }
 0x1e7   : > { %v602_v8 = vsel %vm591_vm7, %v601_v6, %v600_v7 }
 0x1e8   : > { %603 = vst [vmem:[%s297_s11] sm:$0xff] %v602_v8 }
 0x1e9   : > { %967 = shalt.err (!%p964_p13)
}
 0x1ea   : > { %s968_s0 = scalar_lea.hbm %s1486_s5, 128  ;;  %s972_s7 = scalar_lea.hbm %s1538_s3, 256 }
 0x1eb   : > { %p969_p11 = scmp.ne.s32.totalorder %s1486_s5, %s968_s0  ;;  %p973_p6 = scmp.lt.u32.totalorder %s1486_s5, %s1538_s3 }
 0x1ec   : > { %p974_p3 = scmp.lt.u32.totalorder %s972_s7, %s968_s0  ;;  %p976_p0 = scmp.lt.u32.totalorder %s968_s0, %s1486_s5 }
 0x1ed   : > { %p970_p5 = pnand %p969_p11, %p1567_p7 }
 0x1ee   : > { %p975_p2 = por %p974_p3, %p973_p6 }
 0x1ef   : > { %p971_p4 = pneg %p970_p5 }
 0x1f0   : > { %p977_p8 = por %p976_p0, %p975_p2 }
 0x1f2   : > { %p978_p9 = pnand %p977_p8, %p971_p4 }
 0x1f4   : > { %981 = shalt.err (!%p978_p9)
}
 0x1f5   : > { %792 = dma.vmem_to_hbm [thread:$0]  (%p1567_p7), %s1488_s30, 128, %s1486_s5, %s605_s15  }
 0x1f6 PF: > { %s631_s24 = sand.u32 1, %s1020_s12   ;;  %p1568_p12 = scmp.ne.s32.totalorder %s1555_s27, 0 }
 0x1f7   : > { %p1569_p1 = scmp.ge.s32.totalorder %s1040_s17, 2  ;;  %s632_s10 = scalar_lea.sflag [#allocation4], %s631_s24 }
 0x1f9   : > { %p805_p10 = pnand %p1569_p1, %p1568_p12 }
 0x1fb   : > { %1015 = dma.done.wait (!%p805_p10), %s632_s10, 128  }
 0x1fc   : > { %1017 = vsyncadd (!%p805_p10), %s632_s10, 4294967168  ;;  %s22_s17 = sadd.s32 1, %s1040_s17   ;;  %s1570_s15 = sld [smem:[#allocation12_spill]] }
 0x1fd   : > { %p19_p13 = scmp.ge.s32.totalorder %s22_s17, 4   ;;  %s1571_s16 = sld [smem:[#allocation13_spill]] }
 0x1fe   : > { %s1572_s12 = smov %s1024_s13  ;;  %s1573_s13 = smov %s1028_s14 }
 0x1ff   : > { %s1574_s14 = smov %s1129_s26  ;;  %21 = sbr.rel (!%p19_p13) target bundleno = 11 (0xb), region = 101 }
 0x206   :  { %637 = vsyncpa [#allocation3], 1 }
 0x207   :  { %639 = vsyncpa [#allocation3 + $0x1], 1 }
 0x208   :  { %640 = vsyncpa [#allocation6], 1 }
 0x209   :  { %642 = vsyncpa [#allocation6 + $0x1], 1 }
 0x20a   :  { %643 = vsyncpa [#allocation4], 1 }
 0x20b   :  { %645 = vsyncpa [#allocation4 + $0x1], 1 }

</bundles_post_ra>
